<compile_context>
chip_gen: v6e
topology: v6e:2x2x1
jax: 0.10.0
libtpu: 0.0.40
codegen_flags: <defaults>
</compile_context>

<pallas_src>
import functools

import jax
import jax.numpy as jnp
from jax.experimental import pallas as pl
from jax.experimental.pallas import tpu as pltpu

FILTER_SIZES = (3, 4, 5)


def textcnn_kernel(emb_ref, w_ref, b_ref, mask_ref, fcw_ref, fcb_ref, out_ref, *,
                   seq_len, kmax):
    M, E = emb_ref.shape                 # M = B_tile * L (batch*time flattened)
    L = seq_len
    bt = M // L
    n_out = w_ref.shape[-1]              # nb * f_pad (lane-dense)

    # im2col along lanes: kmax time-shifted copies -> (M, kmax*E), built in the
    # matmul dtype.  Shifts go through the XLU rotate (pltpu.roll) on 32-bit data
    # instead of sublane slice+concat copies.  roll(x, M-s) == roll(x, -s), i.e.
    # row t of copy s holds X[t+s]; wrapped rows are masked after ReLU.
    x0 = emb_ref[...]
    flat32 = x0.astype(jnp.float32)      # 32-bit rotate path (robust lowering)
    cols = [x0.astype(w_ref.dtype)]
    for s in range(1, kmax):
        cols.append(pltpu.roll(flat32, M - s, 0).astype(w_ref.dtype))
    x = jnp.concatenate(cols, axis=1)    # (M, kmax*E)

    # One fused MXU matmul for all filter sizes (weights zero-padded to kmax taps
    # and f_pad filters, branch blocks concatenated along the output axis).
    conv = jnp.dot(x, w_ref[...], preferred_element_type=jnp.float32)  # (M, n_out)
    conv = jnp.maximum(conv + b_ref[...], 0.0)            # bias + ReLU (f32, VPU)

    # Zero invalid time positions (t + k > L) with the resident host-built mask,
    # then max-pool over time.  Padded filter columns are all-zero anyway.
    conv = conv.reshape(bt, L, n_out) * mask_ref[...][None]
    pooled = jnp.max(conv, axis=1)                        # (B_tile, n_out)

    # TODO(synk): training-mode dropout (p=0.5) omitted — eval/inference semantics.
    logits = jnp.dot(pooled.astype(fcw_ref.dtype), fcw_ref[...],
                     preferred_element_type=jnp.float32) + fcb_ref[...]
    out_ref[...] = logits.astype(out_ref.dtype)           # (B_tile, c_pad) lane-dense


def textcnn_forward(token_ids, embedding_table, conv_ws, conv_bs, fc_w, fc_b,
                    *, filter_sizes=FILTER_SIZES, batch_tile=256,
                    compute_dtype=jnp.bfloat16):
    """conv_ws[i]: (k_i, E, F) (PyTorch Conv2d weight (F,1,k,E) pre-transposed);
       conv_bs[i]: (1, F); fc_w: (len(filter_sizes)*F, C) (Linear weight
       pre-transposed); fc_b: (1, C)."""
    B, L = token_ids.shape
    E = embedding_table.shape[1]
    F = conv_ws[0].shape[-1]
    C = fc_b.shape[-1]
    kmax = max(filter_sizes)
    nb = len(filter_sizes)
    f_pad = -(-F // 128) * 128          # filter dim -> lane multiple (100 -> 128)
    c_pad = -(-C // 128) * 128          # class dim  -> lane multiple (4 -> 128)
    n_out = nb * f_pad

    # ---- host-side weight prep: pad F->f_pad, taps->kmax, C->c_pad, fuse branches ----
    w_blocks, b_blocks, fcw_blocks = [], [], []
    for i, (k, w, b) in enumerate(zip(filter_sizes, conv_ws, conv_bs)):
        wp = jnp.pad(w, ((0, kmax - k), (0, 0), (0, f_pad - F)))   # (kmax, E, f_pad)
        w_blocks.append(wp.reshape(kmax * E, f_pad))
        b_blocks.append(jnp.pad(b.reshape(1, F), ((0, 0), (0, f_pad - F))))
        fcw_blocks.append(jnp.pad(fc_w[i * F:(i + 1) * F], ((0, f_pad - F), (0, 0))))
    w_all = jnp.concatenate(w_blocks, axis=1).astype(compute_dtype)    # (kmax*E, n_out)
    b_all = jnp.concatenate(b_blocks, axis=1).astype(jnp.float32)      # (1, n_out)
    fcw_all = jnp.concatenate(fcw_blocks, axis=0)                      # (n_out, C)
    fcw_all = jnp.pad(fcw_all, ((0, 0), (0, c_pad - C))).astype(compute_dtype)
    fcb_all = jnp.pad(fc_b.reshape(1, C), ((0, 0), (0, c_pad - C))).astype(jnp.float32)

    # Time-validity mask (L, n_out): row t contributes to a size-k filter iff t+k <= L.
    t_idx = jnp.arange(L)[:, None]
    mask = jnp.concatenate(
        [jnp.broadcast_to((t_idx + k) <= L, (L, f_pad)) for k in filter_sizes],
        axis=1).astype(jnp.float32)                                    # (L, n_out)

    # ---- embedding lookup (gather) is glue, done in plain JAX ----
    # TODO(synk): at production scale, move the gather in-kernel (scalar-prefetched
    # token ids + DMA row gather) to avoid materializing (B, L, E) in HBM.
    emb = jnp.take(embedding_table, token_ids, axis=0).astype(compute_dtype)  # (B,L,E)

    # ---- batch tiling: small B collapses to one grid step; large B -> fat tiles ----
    bt = min(batch_tile, B)
    n_tiles = -(-B // bt)
    b_padded = n_tiles * bt
    if b_padded != B:
        emb = jnp.pad(emb, ((0, b_padded - B), (0, 0), (0, 0)))
    emb_flat = emb.reshape(b_padded * L, E)

    kernel = functools.partial(textcnn_kernel, seq_len=L, kmax=kmax)
    # Unblocked VMEM operands: constants loaded once, no per-step double-buffering.
    vmem_resident = pl.BlockSpec(memory_space=pltpu.MemorySpace.VMEM)

    out = pl.pallas_call(
        kernel,
        out_shape=jax.ShapeDtypeStruct((b_padded, c_pad), jnp.float32),
        grid=(n_tiles,),
        in_specs=[pl.BlockSpec((bt * L, E), lambda i: (i, 0)),
                  vmem_resident, vmem_resident, vmem_resident,
                  vmem_resident, vmem_resident],
        out_specs=pl.BlockSpec((bt, c_pad), lambda i: (i, 0)),
        compiler_params=pltpu.CompilerParams(
            dimension_semantics=("parallel",),
            vmem_limit_bytes=48 * 1024 * 1024),
    )(emb_flat, w_all, b_all, mask, fcw_all, fcb_all)
    return out[:B, :C]


if __name__ == "__main__":
    # Small shapes consistent with the module's forward pass.
    B, L, E = 2, 16, 32          # batch, sequence length, embedding_dim
    VOCAB, FNUM, CLASS = 50, 100, 4

    key = jax.random.PRNGKey(0)
    ks = jax.random.split(key, 10)

    token_ids = jax.random.randint(ks[0], (B, L), 0, VOCAB, dtype=jnp.int32)
    emb_table = 0.1 * jax.random.normal(ks[1], (VOCAB, E), jnp.float32)

    conv_ws, conv_bs = [], []
    for i, k in enumerate(FILTER_SIZES):
        # PyTorch Conv2d weight (F, 1, k, E) stored here as (k, E, F)
        conv_ws.append(0.1 * jax.random.normal(ks[2 + i], (k, E, FNUM), jnp.float32))
        conv_bs.append(0.1 * jax.random.normal(ks[5 + i], (1, FNUM), jnp.float32))

    # PyTorch Linear weight is (CLASS, 3*F); pre-transposed to (3*F, CLASS)
    fc_w = 0.1 * jax.random.normal(ks[8], (len(FILTER_SIZES) * FNUM, CLASS), jnp.float32)
    fc_b = 0.1 * jax.random.normal(ks[9], (1, CLASS), jnp.float32)

    # Performance path: bf16 matmul operands, f32 accumulation/elementwise.
    out_bf16 = jax.block_until_ready(
        textcnn_forward(token_ids, emb_table, conv_ws, conv_bs, fc_w, fc_b))
    # Exactness path: same kernel in f32 for a tight numerical check.
    out_f32 = jax.block_until_ready(
        textcnn_forward(token_ids, emb_table, conv_ws, conv_bs, fc_w, fc_b,
                        compute_dtype=jnp.float32))

    # Pure-JAX f32 reference of the same forward math (eval-mode dropout = identity).
    emb = jnp.take(emb_table, token_ids, axis=0)
    feats = []
    for k, w, b in zip(FILTER_SIZES, conv_ws, conv_bs):
        l_out = L - k + 1
        acc = jnp.zeros((B, l_out, FNUM), jnp.float32)
        for t in range(k):
            acc = acc + jnp.einsum("ble,ef->blf", emb[:, t:t + l_out, :], w[t])
        acc = jax.nn.relu(acc + b[None])
        feats.append(jnp.max(acc, axis=1))
    ref = jnp.concatenate(feats, axis=1) @ fc_w + fc_b

    assert out_bf16.shape == (B, CLASS)
    assert jnp.allclose(out_f32, ref, atol=1e-4, rtol=1e-4), (out_f32, ref)
    assert jnp.allclose(out_bf16, ref, atol=3e-2, rtol=3e-2), (out_bf16, ref)
    print("KERNEL_OK")
</pallas_src>

<mosaic_0001>
module attributes {stable_mosaic.version = 11 : i64} {
  func.func @textcnn_kernel(%arg0: i32, %arg1: memref<32x32xbf16, #tpu.memory_space<vmem>>, %arg2: memref<160x384xbf16, #tpu.memory_space<vmem>>, %arg3: memref<1x384xf32, #tpu.memory_space<vmem>>, %arg4: memref<16x384xf32, #tpu.memory_space<vmem>>, %arg5: memref<384x128xbf16, #tpu.memory_space<vmem>>, %arg6: memref<1x128xf32, #tpu.memory_space<vmem>>, %arg7: memref<2x128xf32, #tpu.memory_space<vmem>>) attributes {dimension_semantics = [#tpu.dimension_semantics<parallel>], iteration_bounds = array<i64: 1>, scalar_prefetch = 0 : i64, scratch_operands = 0 : i64, tpu.core_type = #tpu.core_type<tc>, window_params = [{transform_indices = @transform_0, window_bounds = array<i64: 32, 32>}, {pipeline_mode = #tpu.pipeline_mode<synchronous>, transform_indices = @transform_1, window_bounds = array<i64: 160, 384>}, {pipeline_mode = #tpu.pipeline_mode<synchronous>, transform_indices = @transform_2, window_bounds = array<i64: 1, 384>}, {pipeline_mode = #tpu.pipeline_mode<synchronous>, transform_indices = @transform_3, window_bounds = array<i64: 16, 384>}, {pipeline_mode = #tpu.pipeline_mode<synchronous>, transform_indices = @transform_4, window_bounds = array<i64: 384, 128>}, {pipeline_mode = #tpu.pipeline_mode<synchronous>, transform_indices = @transform_5, window_bounds = array<i64: 1, 128>}, {transform_indices = @transform_6, window_bounds = array<i64: 2, 128>}]} {
    %c0 = arith.constant 0 : index
    %c0_0 = arith.constant 0 : index
    %0 = vector.load %arg1[%c0, %c0_0] : memref<32x32xbf16, #tpu.memory_space<vmem>>, vector<32x32xbf16>
    %1 = arith.extf %0 : vector<32x32xbf16> to vector<32x32xf32>
    %c31_i32 = arith.constant 31 : i32
    %2 = tpu.dynamic_rotate %1 by %c31_i32 dim 0 : vector<32x32xf32>, i32 -> vector<32x32xf32>
    %3 = arith.truncf %2 : vector<32x32xf32> to vector<32x32xbf16>
    %c30_i32 = arith.constant 30 : i32
    %4 = tpu.dynamic_rotate %1 by %c30_i32 dim 0 : vector<32x32xf32>, i32 -> vector<32x32xf32>
    %5 = arith.truncf %4 : vector<32x32xf32> to vector<32x32xbf16>
    %c29_i32 = arith.constant 29 : i32
    %6 = tpu.dynamic_rotate %1 by %c29_i32 dim 0 : vector<32x32xf32>, i32 -> vector<32x32xf32>
    %7 = arith.truncf %6 : vector<32x32xf32> to vector<32x32xbf16>
    %c28_i32 = arith.constant 28 : i32
    %8 = tpu.dynamic_rotate %1 by %c28_i32 dim 0 : vector<32x32xf32>, i32 -> vector<32x32xf32>
    %9 = arith.truncf %8 : vector<32x32xf32> to vector<32x32xbf16>
    %10 = tpu.concatenate %0, %3, %5, %7, %9 in 1 : vector<32x32xbf16>, vector<32x32xbf16>, vector<32x32xbf16>, vector<32x32xbf16>, vector<32x32xbf16> -> vector<32x160xbf16>
    %c0_1 = arith.constant 0 : index
    %c0_2 = arith.constant 0 : index
    %11 = vector.load %arg2[%c0_1, %c0_2] : memref<160x384xbf16, #tpu.memory_space<vmem>>, vector<160x384xbf16>
    %cst = arith.constant dense<0.000000e+00> : vector<32x384xf32>
    %12 = tpu.matmul %10, %11, %cst {dimension_numbers = #tpu.dot_dimension_numbers<[1], [0], [0], [1], [0, 0, 1, 1], [], []>} : vector<32x160xbf16>, vector<160x384xbf16>, vector<32x384xf32> -> vector<32x384xf32>
    %c0_3 = arith.constant 0 : index
    %c0_4 = arith.constant 0 : index
    %13 = vector.load %arg3[%c0_3, %c0_4] : memref<1x384xf32, #tpu.memory_space<vmem>>, vector<1x384xf32>
    %14 = vector.broadcast %13 : vector<1x384xf32> to vector<32x384xf32>
    %15 = arith.addf %12, %14 : vector<32x384xf32>
    %cst_5 = arith.constant 0.000000e+00 : f32
    %16 = vector.broadcast %cst_5 : f32 to vector<32x384xf32>
    %17 = arith.maximumf %15, %16 : vector<32x384xf32>
    %18 = vector.shape_cast %17 : vector<32x384xf32> to vector<2x16x384xf32>
    %c0_6 = arith.constant 0 : index
    %c0_7 = arith.constant 0 : index
    %19 = vector.load %arg4[%c0_6, %c0_7] : memref<16x384xf32, #tpu.memory_space<vmem>>, vector<16x384xf32>
    %20 = vector.shape_cast %19 : vector<16x384xf32> to vector<1x16x384xf32>
    %21 = vector.broadcast %20 : vector<1x16x384xf32> to vector<2x16x384xf32>
    %22 = arith.mulf %18, %21 : vector<2x16x384xf32>
    %cst_8 = arith.constant dense<0xFF800000> : vector<2x384xf32>
    %23 = vector.multi_reduction <maximumf>, %22, %cst_8 [1] : vector<2x16x384xf32> to vector<2x384xf32>
    %24 = arith.truncf %23 : vector<2x384xf32> to vector<2x384xbf16>
    %c0_9 = arith.constant 0 : index
    %c0_10 = arith.constant 0 : index
    %25 = vector.load %arg5[%c0_9, %c0_10] : memref<384x128xbf16, #tpu.memory_space<vmem>>, vector<384x128xbf16>
    %cst_11 = arith.constant dense<0.000000e+00> : vector<2x128xf32>
    %26 = tpu.matmul %24, %25, %cst_11 {dimension_numbers = #tpu.dot_dimension_numbers<[1], [0], [0], [1], [0, 0, 1, 1], [], []>} : vector<2x384xbf16>, vector<384x128xbf16>, vector<2x128xf32> -> vector<2x128xf32>
    %c0_12 = arith.constant 0 : index
    %c0_13 = arith.constant 0 : index
    %27 = vector.load %arg6[%c0_12, %c0_13] : memref<1x128xf32, #tpu.memory_space<vmem>>, vector<1x128xf32>
    %28 = vector.broadcast %27 : vector<1x128xf32> to vector<2x128xf32>
    %29 = arith.addf %26, %28 : vector<2x128xf32>
    %c0_14 = arith.constant 0 : index
    %c0_15 = arith.constant 0 : index
    %30 = vector.load %arg7[%c0_14, %c0_15] : memref<2x128xf32, #tpu.memory_space<vmem>>, vector<2x128xf32>
    tpu.vector_store %arg7[%c0_14, %c0_15], %29 {strides = array<i32>} : memref<2x128xf32, #tpu.memory_space<vmem>>, vector<2x128xf32>,
    return
  }
  func.func @transform_0(%arg0: i32) -> (i32, i32) {
    %c0_i32 = arith.constant 0 : i32
    %c0_i32_0 = arith.constant 0 : i32
    return %arg0, %c0_i32 : i32, i32
  }
  func.func @transform_1(%arg0: i32) -> (i32, i32) {
    %c0_i32 = arith.constant 0 : i32
    %c0_i32_0 = arith.constant 0 : i32
    %c0_i32_1 = arith.constant 0 : i32
    return %c0_i32, %c0_i32_0 : i32, i32
  }
  func.func @transform_2(%arg0: i32) -> (i32, i32) {
    %c0_i32 = arith.constant 0 : i32
    %c0_i32_0 = arith.constant 0 : i32
    %c0_i32_1 = arith.constant 0 : i32
    return %c0_i32, %c0_i32_0 : i32, i32
  }
  func.func @transform_3(%arg0: i32) -> (i32, i32) {
    %c0_i32 = arith.constant 0 : i32
    %c0_i32_0 = arith.constant 0 : i32
    %c0_i32_1 = arith.constant 0 : i32
    return %c0_i32, %c0_i32_0 : i32, i32
  }
  func.func @transform_4(%arg0: i32) -> (i32, i32) {
    %c0_i32 = arith.constant 0 : i32
    %c0_i32_0 = arith.constant 0 : i32
    %c0_i32_1 = arith.constant 0 : i32
    return %c0_i32, %c0_i32_0 : i32, i32
  }
  func.func @transform_5(%arg0: i32) -> (i32, i32) {
    %c0_i32 = arith.constant 0 : i32
    %c0_i32_0 = arith.constant 0 : i32
    %c0_i32_1 = arith.constant 0 : i32
    return %c0_i32, %c0_i32_0 : i32, i32
  }
  func.func @transform_6(%arg0: i32) -> (i32, i32) {
    %c0_i32 = arith.constant 0 : i32
    %c0_i32_0 = arith.constant 0 : i32
    return %arg0, %c0_i32 : i32, i32
  }
}

</mosaic_0001>

<bundles_post_ra>
// kernel: tpu_custom_call.1
= control target key start
LH: loop header
LB: loop body
LE: loop exit
PB: predicated region body
PF: predicated region fallthrough
CT: control target
= control target key end

     0   :  { %11 = vsyncpa [#allocation3], 0  ;;  %s1382_s0 = inlined_call_operand.hbm [shape: bf16[32,32], index: 0, kind: input, shape index: {}]   ;;  %s1383_s1 = inlined_call_operand.hbm [shape: bf16[160,384], index: 1, kind: input, shape index: {}]   ;;  %s1384_s2 = inlined_call_operand.vmem [shape: f32[1,384], index: 2, kind: input, shape index: {}]   ;;  %s1385_s3 = inlined_call_operand.hbm [shape: f32[16,384], index: 3, kind: input, shape index: {}]   ;;  %s1386_s4 = inlined_call_operand.hbm [shape: bf16[384,128], index: 4, kind: input, shape index: {}]   ;;  %s1387_s5 = inlined_call_operand.vmem [shape: f32[1,128], index: 5, kind: input, shape index: {}]   ;;  %s1388_s6 = inlined_call_operand.hbm [shape: f32[2,128], index: 6, kind: output, shape index: {}]  }
   0x1   :  { %12 = vsyncpa [#allocation6], 0 }
   0x2   :  { %13 = vsyncpa [#allocation9], 0 }
   0x3   :  { %14 = vsyncpa [#allocation4], 0  ;;  %s1207_s21 = smov [#allocation5]  }
   0x4   :  { %s32_s22 = sshll.u32 %s1207_s21, 4  ;;  %s33_s22 = int_to_ptr.vmem [resolvable:$true] %s32_s22 }
   0x5   :  { %s1107_s23 = scalar_lea.vmem %s33_s22, 3840  ;;  %p1112_p1 = scmp.lt.s32.totalorder %s33_s22, %s33_s22 }
   0x6   :  { %p1108_p0 = scmp.ne.s32.totalorder %s33_s22, %s1107_s23  ;;  %p1113_p2 = scmp.lt.s32.totalorder %s1107_s23, %s1107_s23 }
   0x8   :  { %p1114_p3 = por %p1113_p2, %p1112_p1 }
   0xa   :  { %p1115_p4 = pnand %p1114_p3, %p1108_p0 }
   0xc   :  { %1118 = shalt.err (!%p1115_p4)
}
   0xd   :  { %s1208_s24 = smov 192   ;;  %s1209_s25 = smov 12  }
   0xe   :  { %38 = dma.hbm_to_vmem [thread:$0]  %s1383_s1, 3840, %s33_s22, [#allocation6], %s1208_s24, %s1208_s24, %s1209_s25  }
   0xf   :  { %s1210_s28 = smov [#allocation2]  }
  0x10   :  { %s20_s29 = sshll.u32 %s1210_s28, 4  ;;  %s21_s29 = int_to_ptr.vmem [resolvable:$true] %s20_s29 }
  0x11   :  { %s1127_s30 = scalar_lea.vmem %s21_s29, 256  ;;  %p1132_p6 = scmp.lt.s32.totalorder %s21_s29, %s21_s29 }
  0x12   :  { %p1128_p5 = scmp.ne.s32.totalorder %s21_s29, %s1127_s30  ;;  %p1133_p7 = scmp.lt.s32.totalorder %s1127_s30, %s1127_s30 }
  0x14   :  { %p1134_p8 = por %p1133_p7, %p1132_p6 }
  0x16   :  { %p1135_p9 = pnand %p1134_p8, %p1128_p5 }
  0x18   :  { %1138 = shalt.err (!%p1135_p9)
}
  0x19   :  { %s1211_s7 = smov 64   ;;  %s1212_s8 = smov 4  }
  0x1a   :  { %26 = dma.hbm_to_vmem [thread:$0]  %s1382_s0, 256, %s21_s29, [#allocation3], %s1211_s7, %s1211_s7, %s1212_s8  }
  0x1b   :  { %s1213_s11 = smov [#allocation7]  }
  0x1c   :  { %s46_s1 = sshll.u32 %s1213_s11, 4  ;;  %s47_s1 = int_to_ptr.vmem [resolvable:$true] %s46_s1 }
  0x1d   :  { %s1147_s12 = scalar_lea.vmem %s47_s1, 768  ;;  %p1152_p11 = scmp.lt.s32.totalorder %s47_s1, %s47_s1 }
  0x1e   :  { %p1148_p10 = scmp.ne.s32.totalorder %s47_s1, %s1147_s12  ;;  %p1153_p12 = scmp.lt.s32.totalorder %s1147_s12, %s1147_s12 }
  0x20   :  { %p1154_p13 = por %p1153_p12, %p1152_p11 }
  0x22   :  { %p1155_p0 = pnand %p1154_p13, %p1148_p10 }
  0x24   :  { %1158 = shalt.err (!%p1155_p0)
}
  0x25   :  { %s1214_s13 = smov 384   ;;  %s1215_s14 = smov 24  }
  0x26   :  { %52 = dma.hbm_to_vmem [thread:$0]  %s1385_s3, 768, %s47_s1, [#allocation6], %s1214_s13, %s1214_s13, %s1215_s14  }
  0x27   :  { %s1216_s17 = smov [#allocation8]  }
  0x28   :  { %s58_s18 = sshll.u32 %s1216_s17, 4  ;;  %s59_s18 = int_to_ptr.vmem [resolvable:$true] %s58_s18 }
  0x29   :  { %s1167_s0 = scalar_lea.vmem %s59_s18, 3072  ;;  %p1172_p2 = scmp.lt.s32.totalorder %s59_s18, %s59_s18 }
  0x2a   :  { %p1168_p1 = scmp.ne.s32.totalorder %s59_s18, %s1167_s0  ;;  %p1173_p3 = scmp.lt.s32.totalorder %s1167_s0, %s1167_s0 }
  0x2c   :  { %p1174_p4 = por %p1173_p3, %p1172_p2 }
  0x2e   :  { %p1175_p5 = pnand %p1174_p4, %p1168_p1 }
  0x30   :  { %1178 = shalt.err (!%p1175_p5)
}
  0x31   :  { %64 = dma.hbm_to_vmem [thread:$0]  %s1386_s4, 3072, %s59_s18, [#allocation9], %s1211_s7, %s1211_s7, %s1212_s8  }
  0x32   :  { %1199 = dma.done.wait [#allocation3], 256  }
  0x33   :  { %1200 = vsyncadd [#allocation3], 4294967040 }
  0x34   :  { %1201 = dma.done.wait [#allocation6], 4608  }
  0x35   :  { %1202 = vsyncadd [#allocation6], 4294962688 }
  0x36   :  { %1203 = dma.done.wait [#allocation9], 3072  }
  0x37   :  { %1204 = vsyncadd [#allocation9], 4294964224  ;;  %v92_v0 = vlaneseq  ;;  %v1217_v1 = vmov 0   ;;  %v1277_v3 = vld [vmem:[#allocation2] sm:$0xff]   ;;  %v1279_v4 = vld [vmem:[#allocation2 + $0x8] sm:$0xff]   ;;  %s1218_s3 = smov 32  }
  0x38   :  { %457 = vmatprep.subr.bf16.mxu1 %v1217_v1  ;;  %v1285_v5 = vunpack.c.l.bf16 %v1277_v3  ;;  %v1288_v6 = vunpack.c.h.bf16 %v1277_v3  ;;  %v1291_v7 = vunpack.c.l.bf16 %v1279_v4  ;;  %v1294_v8 = vunpack.c.h.bf16 %v1279_v4  ;;  %v1031_v9 = vld [vmem:[#allocation5 + $0xac] ss:$12 sps:$4 sm:$0xff]   ;;  %v1033_v10 = vld [vmem:[#allocation5 + $0xa8] ss:$12 sps:$4 sm:$0xff]   ;;  %v1034_v11 = vld [vmem:[#allocation5 + $0xb0] ss:$12 sps:$4 sm:$0xff]  }
  0x39   :  { %v1275_v2 = vshrl.u32 %v92_v0, 7  ;;  %404 = vmatprep.subr.bf16.mxu0 %v1031_v9  ;;  %458 = vmatpush1.bf16.msra.mxu1 %v1034_v11  ;;  %v1035_v20 = vld [vmem:[#allocation5 + $0x94] ss:$12 sps:$4 sm:$0xff]   ;;  %v1037_v25 = vld [vmem:[#allocation5 + $0x90] ss:$12 sps:$4 sm:$0xff]   ;;  %s1219_s4 = smov 96  }
  0x3a   :  { %v88_v12 = vrot.slane %v1285_v5, 1  ;;  %v89_v13 = vrot.slane %v1288_v6, 1  ;;  %v90_v14 = vrot.slane %v1291_v7, 1  ;;  %v112_v15 = vrot.slane %v1285_v5, 3  ;;  %405 = vmatpush1.bf16.msra.mxu0 %v1033_v10  ;;  %459 = vmatprep.subr.bf16.mxu1 %v1217_v1  ;;  %v1038_v30 = vld [vmem:[#allocation5 + $0x98] ss:$12 sps:$4 sm:$0xff]  }
  0x3b   :  { %vm94_vm0 = vcmp.lt.s32.totalorder %v1275_v2, 7  ;;  %vm116_vm1 = vcmp.lt.s32.totalorder %v1275_v2, 5  ;;  %vm105_vm2 = vcmp.lt.s32.totalorder %v1275_v2, 6  ;;  %vm127_vm3 = vcmp.lt.s32.totalorder %v1275_v2, 4  ;;  %406 = vmatprep.subr.bf16.mxu0 %v1035_v20  ;;  %v1039_v35 = vld [vmem:[#allocation5 + $0x7c] ss:$12 sps:$4 sm:$0xff]  }
  0x3c   :  { %v113_v16 = vrot.slane %v1288_v6, 3  ;;  %v114_v17 = vrot.slane %v1291_v7, 3  ;;  %v101_v18 = vrot.slane %v1285_v5, 2  ;;  %v102_v19 = vrot.slane %v1288_v6, 2  ;;  %v1041_v36 = vld [vmem:[#allocation5 + $0x78] ss:$12 sps:$4 sm:$0xff]  }
  0x3d   :  { %v96_v21 = vsel %vm94_vm0, %v89_v13, %v90_v14  ;;  %v97_v22 = vsel %vm94_vm0, %v88_v12, %v89_v13  ;;  %v103_v23 = vrot.slane %v1291_v7, 2  ;;  %v91_v24 = vrot.slane %v1294_v8, 1  ;;  %460 = vmatpush1.bf16.msra.mxu1 %v1038_v30  ;;  %v1042_v41 = vld [vmem:[#allocation5 + $0x80] ss:$12 sps:$4 sm:$0xff]   ;;  %v1043_v48 = vld [vmem:[#allocation5 + $0x64] ss:$12 sps:$4 sm:$0xff]  }
  0x3e   :  { %v99_v26 = vpack.c.bf16 %v96_v21, %v97_v22  ;;  %v118_v27 = vsel %vm116_vm1, %v113_v16, %v114_v17  ;;  %v119_v28 = vsel %vm116_vm1, %v112_v15, %v113_v16  ;;  %v108_v29 = vsel %vm105_vm2, %v101_v18, %v102_v19  ;;  %407 = vmatpush1.bf16.msra.mxu0 %v1037_v25  ;;  %v1045_v51 = vld [vmem:[#allocation5 + $0x60] ss:$12 sps:$4 sm:$0xff]   ;;  %v1046_v55 = vld [vmem:[#allocation5 + $0x68] ss:$12 sps:$4 sm:$0xff]   ;;  %v1050_v63 = vld [vmem:[#allocation5 + $0x50] ss:$12 sps:$4 sm:$0xff]  }
  0x3f   :  { %v121_v31 = vpack.c.bf16 %v118_v27, %v119_v28  ;;  %v107_v32 = vsel %vm105_vm2, %v102_v19, %v103_v23  ;;  %v95_v33 = vsel %vm94_vm0, %v90_v14, %v91_v24  ;;  %v98_v34 = vsel %vm94_vm0, %v91_v24, %v88_v12  ;;  %408 = vmatprep.subr.bf16.mxu0 %v1039_v35  ;;  %v1047_v57 = vld [vmem:[#allocation5 + $0x4c] ss:$12 sps:$4 sm:$0xff]   ;;  %v1049_v62 = vld [vmem:[#allocation5 + $0x48] ss:$12 sps:$4 sm:$0xff]   ;;  %v1059_v10 = vld [vmem:[#allocation5 + $0x4] ss:$12 sps:$4 sm:$0xff]  }
  0x40   :  { %146 = vrot.lane.b32.xlu0 %v99_v26, %s1218_s3  ;;  %v110_v37 = vpack.c.bf16 %v107_v32, %v108_v29  ;;  %v104_v38 = vrot.slane %v1294_v8, 2  ;;  %v115_v39 = vrot.slane %v1294_v8, 3  ;;  %v100_v40 = vpack.c.bf16 %v98_v34, %v95_v33  ;;  %461 = vmatprep.subr.bf16.mxu1 %v1217_v1  ;;  %v1051_v0 = vld [vmem:[#allocation5 + $0x34] ss:$12 sps:$4 sm:$0xff]   ;;  %v1063_v13 = vld [vmem:[#allocation5 + $0xdc] ss:$12 sps:$4 sm:$0xff]  }
  0x41   :  { %158 = vrot.lane.b32.xlu1 %v121_v31, %s1219_s4  ;;  %v123_v42 = vrot.slane %v1285_v5, 4  ;;  %v124_v43 = vrot.slane %v1288_v6, 4  ;;  %v125_v49 = vrot.slane %v1291_v7, 4  ;;  %v126_v53 = vrot.slane %v1294_v8, 4  ;;  %462 = vmatpush1.bf16.msra.mxu1 %v1042_v41  ;;  %v1053_v5 = vld [vmem:[#allocation5 + $0x30] ss:$12 sps:$4 sm:$0xff]  }
  0x42   :  { %v106_v44 = vsel %vm105_vm2, %v103_v23, %v104_v38  ;;  %v109_v45 = vsel %vm105_vm2, %v104_v38, %v101_v18  ;;  %v117_v46 = vsel %vm116_vm1, %v114_v17, %v115_v39  ;;  %v120_v47 = vsel %vm116_vm1, %v115_v39, %v112_v15  ;;  %409 = vmatpush1.bf16.msra.mxu0 %v1041_v36  ;;  %v1054_v6 = vld [vmem:[#allocation5 + $0x38] ss:$12 sps:$4 sm:$0xff]   ;;  %v1055_v7 = vld [vmem:[#allocation5 + $0x1c] ss:$12 sps:$4 sm:$0xff]   ;;  %v1058_v9 = vld [vmem:[#allocation5 + $0x20] ss:$12 sps:$4 sm:$0xff]  }
  0x43   :  { %v111_v50 = vpack.c.bf16 %v109_v45, %v106_v44  ;;  %v130_v52 = vsel %vm127_vm3, %v123_v42, %v124_v43  ;;  %v122_v54 = vpack.c.bf16 %v120_v47, %v117_v46  ;;  %v129_v56 = vsel %vm127_vm3, %v124_v43, %v125_v49  ;;  %410 = vmatprep.subr.bf16.mxu0 %v1043_v48  ;;  %v1057_v8 = vld [vmem:[#allocation5 + $0x18] ss:$12 sps:$4 sm:$0xff]   ;;  %v1061_v11 = vld [vmem:[#allocation5] ss:$12 sps:$4 sm:$0xff]   ;;  %v1062_v12 = vld [vmem:[#allocation5 + $0x8] ss:$12 sps:$4 sm:$0xff]  }
  0x44   :  { %152 = vrot.lane.b32.xlu0 %v110_v37, %s1211_s7  ;;  %463 = vmatprep.subr.bf16.mxu1 %v1217_v1  ;;  %v128_v58 = vsel %vm127_vm3, %v125_v49, %v126_v53  ;;  %v131_v59 = vsel %vm127_vm3, %v126_v53, %v123_v42  ;;  %v132_v60 = vpack.c.bf16 %v129_v56, %v130_v52  ;;  %vm162_vm4 = vcmask 261120   ;;  %v1065_v14 = vld [vmem:[#allocation5 + $0xd8] ss:$12 sps:$4 sm:$0xff]   ;;  %v1066_v15 = vld [vmem:[#allocation5 + $0xe0] ss:$12 sps:$4 sm:$0xff]   ;;  %v1077_v33 = vld [vmem:[#allocation8 + $0x70] sm:$0xff]  }
  0x45   :  { %148 = vrot.lane.b32.xlu1 %v100_v40, %s1218_s3  ;;  %v1350_v61 = vpack.c.bf16 %v131_v59, %v128_v58  ;;  %464 = vmatpush1.bf16.msra.mxu1 %v1046_v55  ;;  %v1068_v16 = vld [vmem:[#allocation5 + $0xc4] ss:$12 sps:$4 sm:$0xff]   ;;  %v1070_v17 = vld [vmem:[#allocation5 + $0xc0] ss:$12 sps:$4 sm:$0xff]   ;;  %v1071_v18 = vld [vmem:[#allocation5 + $0xc8] ss:$12 sps:$4 sm:$0xff]  }
  0x46   :  { %411 = vmatpush1.bf16.msra.mxu0 %v1045_v51  ;;  %465 = vmatprep.subr.bf16.mxu1 %v1217_v1  ;;  %vm169_vm5 = vcmask 523264   ;;  %vm174_vm6 = vcmask 785408   ;;  %v1220_v30 = vmov 0.0   ;;  %v1074_v31 = vld [vmem:[#allocation8 + $0x78] sm:$0xff]   ;;  %v1078_v34 = vld [vmem:[#allocation8 + $0x30] sm:$0xff]   ;;  %v1079_v35 = vld [vmem:[#allocation8 + $0xa8] sm:$0xff]  }
  0x47   :  { %412 = vmatprep.subr.bf16.mxu0 %v1047_v57  ;;  %935 = vmatprep.mubr.msk.bf16.mxu0 %vm162_vm4, %v132_v60  ;;  %v1075_v32 = vld [vmem:[#allocation8 + $0x38] sm:$0xff]   ;;  %v1080_v36 = vld [vmem:[#allocation8 + $0x68] sm:$0xff]   ;;  %v1082_v38 = vld [vmem:[#allocation8 + $0xa0] sm:$0xff]   ;;  %vm1221_vm7 = vmmov 0   ;;  %v225_v53 = vsub.s32 0, %v1275_v2  ;;  %v233_v55 = vsub.s32 2, %v1275_v2 }
  0x48   :  { %154 = vrot.lane.b32.xlu0 %v111_v50, %s1211_s7  ;;  %937 = vmatprep.mubr.msk.bf16.mxu1 %vm162_vm4, %v132_v60  ;;  %v1081_v37 = vld [vmem:[#allocation8 + $0x28] sm:$0xff]   ;;  %v1083_v39 = vld [vmem:[#allocation8 + $0x60] sm:$0xff]   ;;  %v1085_v41 = vld [vmem:[#allocation8 + $0x98] sm:$0xff]   ;;  %v229_v56 = vsub.s32 1, %v1275_v2  ;;  %vm651_vm8 = vcmask 1041409   ;;  %s1222_s24 = smov [#allocation10]  }
  0x49   :  { %160 = vrot.lane.b32.xlu1 %v122_v54, %s1219_s4  ;;  %466 = vmatpush1.bf16.msra.mxu1 %v1050_v63  ;;  %v1084_v40 = vld [vmem:[#allocation8 + $0x20] sm:$0xff]   ;;  %v1086_v42 = vld [vmem:[#allocation8 + $0x58] sm:$0xff]   ;;  %v1088_v44 = vld [vmem:[#allocation8 + $0x90] sm:$0xff]   ;;  %s892_s25 = sshll.u32 %s1222_s24, 4  ;;  %s893_s25 = int_to_ptr.vmem [resolvable:$true] %s892_s25 }
  0x4a   :  { %413 = vmatpush1.bf16.msra.mxu0 %v1049_v62  ;;  %467 = vmatprep.subr.bf16.mxu1 %v1217_v1  ;;  %v1087_v43 = vld [vmem:[#allocation8 + $0x18] sm:$0xff]   ;;  %v1089_v45 = vld [vmem:[#allocation8 + $0x50] sm:$0xff]   ;;  %v1091_v47 = vld [vmem:[#allocation8 + $0x88] sm:$0xff]   ;;  %s1179_s26 = scalar_lea.vmem %s893_s25, 32  ;;  %p1184_p7 = scmp.lt.s32.totalorder %s893_s25, %s893_s25 }
  0x4b   :  { %414 = vmatprep.subr.bf16.mxu0 %v1051_v0  ;;  %v1090_v46 = vld [vmem:[#allocation8 + $0x10] sm:$0xff]   ;;  %v1092_v48 = vld [vmem:[#allocation8 + $0x48] sm:$0xff]   ;;  %v1094_v50 = vld [vmem:[#allocation8 + $0x80] sm:$0xff]   ;;  %p1180_p6 = scmp.ne.s32.totalorder %s893_s25, %s1179_s26  ;;  %p1185_p8 = scmp.lt.s32.totalorder %s1179_s26, %s1179_s26 }
  0x4c   :  { %v1093_v49 = vld [vmem:[#allocation8 + $0x8] sm:$0xff]   ;;  %v1095_v51 = vld [vmem:[#allocation8 + $0x40] sm:$0xff]   ;;  %v221_v54 = vld [vmem:[%s1384_s2] sm:$0x7] }
  0x4d   :  { %468 = vmatpush1.bf16.msra.mxu1 %v1054_v6  ;;  %v1096_v52 = vld [vmem:[#allocation8] sm:$0xff]   ;;  %v226_v57 = vrot.slane %v221_v54, %v225_v53  ;;  %v234_v58 = vrot.slane %v221_v54, %v233_v55  ;;  %v230_v59 = vrot.slane %v221_v54, %v229_v56  ;;  %p1186_p9 = por %p1185_p8, %p1184_p7 }
  0x4e   :  { %415 = vmatpush1.bf16.msra.mxu0 %v1053_v5  ;;  %469 = vmatprep.subr.bf16.mxu1 %v1217_v1 }
  0x4f   :  { %416 = vmatprep.subr.bf16.mxu0 %v1055_v7  ;;  %p1187_p10 = pnand %p1186_p9, %p1180_p6 }
  0x51   :  { %470 = vmatpush1.bf16.msra.mxu1 %v1058_v9 }
  0x52   :  { %417 = vmatpush1.bf16.msra.mxu0 %v1057_v8  ;;  %471 = vmatprep.subr.bf16.mxu1 %v1217_v1 }
  0x53   :  { %418 = vmatprep.subr.bf16.mxu0 %v1059_v10 }
  0x55   :  { %472 = vmatpush1.bf16.msra.mxu1 %v1062_v12 }
  0x56   :  { %419 = vmatpush1.bf16.msra.mxu0 %v1061_v11  ;;  %485 = vmatprep.subr.bf16.mxu1 %v1217_v1  ;;  %v518_v11 = vld [vmem:[#allocation7] sm:$0xff] }
  0x57   :  { %432 = vmatprep.subr.bf16.mxu0 %v1063_v13  ;;  %v521_v13 = vld [vmem:[#allocation7 + $0x18] sm:$0xff] }
  0x59   :  { %486 = vmatpush2.bf16.msra.mxu1 %v1066_v15 }
  0x5a   :  { %433 = vmatpush2.bf16.msra.mxu0 %v1065_v14  ;;  %487 = vmatprep.subr.bf16.mxu1 %v1217_v1 }
  0x5b   :  { %434 = vmatprep.subr.bf16.mxu0 %v1068_v16  ;;  %v520_v16 = vld [vmem:[#allocation7 + $0x10] sm:$0xff] }
  0x5d   :  { %488 = vmatpush2.bf16.msra.mxu1 %v1071_v18 }
  0x5e   :  { %435 = vmatpush2.bf16.msra.mxu0 %v1070_v17  ;;  %995 = vmatprep.subr.bf16.mxu1 %v1220_v30 }
  0x5f   :  { %964 = vmatprep.subr.bf16.mxu0 %v1074_v31 }
  0xb2   :  { %v147_v19 = vpop.permute.xlu0 %146 }
  0xb3   :  { %v159_v20 = vpop.permute.xlu1 %158  ;;  %v165_v21 = vsel %vm162_vm4, %v1277_v3, %v147_v19  ;;  %v1073_v3 = vld [vmem:[#allocation8 + $0xb8] sm:$0xff]  }
  0xb4   :  { %v523_v19 = vld [vmem:[#allocation7 + $0x28] sm:$0xff] }
  0xb6   :  { %v153_v22 = vpop.permute.xlu0 %152 }
  0xb7   :  { %v171_v23 = vsel %vm169_vm5, %v165_v21, %v153_v22  ;;  %v149_v24 = vpop.permute.xlu1 %148  ;;  %v519_v21 = vld [vmem:[#allocation7 + $0x8] sm:$0xff] }
  0xb8   :  { %v176_v25 = vsel %vm174_vm6, %v171_v23, %v159_v20  ;;  %v168_v26 = vsel %vm162_vm4, %v1279_v4, %v149_v24  ;;  %v1076_v4 = vld [vmem:[#allocation8 + $0xb0] sm:$0xff]  }
  0xb9   :  { %437 = vmatmul.mubr.bf16.vlgmr.msra.gmra.mxu0 %v176_v25  ;;  %490 = vmatmul.mubr.bf16.vlgmr.msra.gmra.mxu1 %v176_v25  ;;  %v522_v23 = vld [vmem:[#allocation7 + $0x20] sm:$0xff] }
  0xba   :  { %v155_v27 = vpop.permute.xlu0 %154  ;;  %936 = vmatprep.mubr.msk.bf16.mxu0 %vm162_vm4, %v1350_v61  ;;  %938 = vmatprep.mubr.msk.bf16.mxu1 %vm162_vm4, %v1350_v61 }
  0xbb   :  { %v173_v1 = vsel %vm169_vm5, %v168_v26, %v155_v27  ;;  %v161_v28 = vpop.permute.xlu1 %160  ;;  %996 = vmatpush3.bf16.msra.mxu1 %v1073_v3  ;;  %965 = vmatpush3.bf16.msra.mxu0 %v1075_v32 }
  0xbc   :  { %v179_v29 = vsel %vm174_vm6, %v173_v1, %v161_v28  ;;  %997 = vmatprep.subr.bf16.mxu1 %v1220_v30  ;;  %966 = vmatprep.subr.bf16.mxu0 %v1077_v33 }
  0xbf   :  { %998 = vmatpush3.bf16.msra.mxu1 %v1076_v4  ;;  %967 = vmatpush3.bf16.msra.mxu0 %v1078_v34 }
  0xc0   :  { %999 = vmatprep.subr.bf16.mxu1 %v1220_v30  ;;  %968 = vmatprep.subr.bf16.mxu0 %v1080_v36 }
  0xc1   :  { %447 = vmatmul.mubr.bf16.gmra.mxu0 %v179_v29  ;;  %498 = vmatmul.mubr.bf16.gmra.mxu1 %v179_v29 }
  0xc2   :  { %1011 = vmatprep.mubr.msk.bf16.mxu1 %vm1221_vm7, %v1220_v30 }
  0xc3   :  { %1000 = vmatpush3.bf16.msra.mxu1 %v1079_v35  ;;  %969 = vmatpush3.bf16.msra.mxu0 %v1081_v37 }
  0xc4   :  { %1001 = vmatprep.subr.bf16.mxu1 %v1220_v30  ;;  %970 = vmatprep.subr.bf16.mxu0 %v1083_v39 }
  0xc7   :  { %1002 = vmatpush3.bf16.msra.mxu1 %v1082_v38  ;;  %971 = vmatpush3.bf16.msra.mxu0 %v1084_v40 }
  0xc8   :  { %1003 = vmatprep.subr.bf16.mxu1 %v1220_v30  ;;  %972 = vmatprep.subr.bf16.mxu0 %v1086_v42 }
  0xcb   :  { %1004 = vmatpush3.bf16.msra.mxu1 %v1085_v41  ;;  %973 = vmatpush3.bf16.msra.mxu0 %v1087_v43 }
  0xcc   :  { %1005 = vmatprep.subr.bf16.mxu1 %v1220_v30  ;;  %974 = vmatprep.subr.bf16.mxu0 %v1089_v45 }
  0xcf   :  { %1006 = vmatpush3.bf16.msra.mxu1 %v1088_v44  ;;  %975 = vmatpush3.bf16.msra.mxu0 %v1090_v46 }
  0xd0   :  { %1007 = vmatprep.subr.bf16.mxu1 %v1220_v30  ;;  %976 = vmatprep.subr.bf16.mxu0 %v1092_v48 }
  0xd3   :  { %1008 = vmatpush3.bf16.msra.mxu1 %v1091_v47  ;;  %977 = vmatpush3.bf16.msra.mxu0 %v1093_v49 }
  0xd4   :  { %1009 = vmatprep.subr.bf16.mxu1 %v1220_v30  ;;  %978 = vmatprep.subr.bf16.mxu0 %v1095_v51 }
  0xd7   :  { %1010 = vmatpush3.bf16.msra.mxu1 %v1094_v50  ;;  %979 = vmatpush3.bf16.msra.mxu0 %v1096_v52 }
 0x179   :  { %v438_v60 = vpop.f32.mrf.mxu0  ;;  %v491_v61 = vpop.f32.mrf.mxu1 }
 0x17a   :  { %v439_v62 = vadd.f32 %v438_v60, %v226_v57  ;;  %v492_v63 = vadd.f32 %v491_v61, %v234_v58 }
 0x17b   :  { %v440_v0 = vpop.f32.mrf.mxu0  ;;  %v493_v5 = vpop.f32.mrf.mxu1 }
 0x17c   :  { %v441_v6 = vadd.f32 %v440_v0, %v230_v59  ;;  %v506_v9 = vmax.f32 %v439_v62, 0.0  ;;  %v508_v12 = vmax.f32 %v492_v63, 0.0 }
 0x17d   :  { %v442_v7 = vpop.f32.mrf.mxu0  ;;  %v494_v8 = vpop.f32.mrf.mxu1 }
 0x17e   :  { %v443_v10 = vadd.f32 %v442_v7, %v226_v57  ;;  %v495_v14 = vadd.f32 %v494_v8, %v234_v58  ;;  %v507_v17 = vmax.f32 %v441_v6, 0.0  ;;  %v524_v26 = vmul.f32 %v518_v11, %v506_v9 }
 0x17f   :  { %v444_v15 = vpop.f32.mrf.mxu0  ;;  %v496_v2 = vpop.f32.mrf.mxu1  ;;  %v526_v29 = vmul.f32 %v520_v16, %v508_v12 }
 0x180   :  { %v509_v18 = vmax.f32 %v443_v10, 0.0  ;;  %v445_v20 = vadd.f32 %v444_v15, %v230_v59  ;;  %v511_v22 = vmax.f32 %v495_v14, 0.0  ;;  %v525_v4 = vmul.f32 %v519_v21, %v507_v17 }
 0x181   :  { %v448_v24 = vpop.f32.mrf.mxu0  ;;  %v499_v25 = vpop.f32.mrf.mxu1 }
 0x182   :  { %v527_v27 = vmul.f32 %v521_v13, %v509_v18  ;;  %v510_v1 = vmax.f32 %v445_v20, 0.0  ;;  %v449_v28 = vadd.f32 %v448_v24, %v226_v57  ;;  %v529_v3 = vmul.f32 %v523_v19, %v511_v22 }
 0x183   :  { %v500_v30 = vadd.f32 %v499_v25, %v234_v58  ;;  %v450_v31 = vpop.f32.mrf.mxu0  ;;  %v501_v32 = vpop.f32.mrf.mxu1 }
 0x184   :  { %v536_v33 = vmax.f32 %v524_v26, %v527_v27  ;;  %v528_v34 = vmul.f32 %v522_v23, %v510_v1  ;;  %v550_v35 = vmax.f32 %v526_v29, %v529_v3  ;;  %v451_v36 = vadd.f32 %v450_v31, %v230_v59 }
 0x185   :  { %v452_v37 = vpop.f32.mrf.mxu0  ;;  %v502_v38 = vpop.f32.mrf.mxu1  ;;  %v512_v41 = vmax.f32 %v449_v28, 0.0  ;;  %v514_v43 = vmax.f32 %v500_v30, 0.0 }
 0x186   :  { %v537_v39 = vrot.slane %v536_v33, 4  ;;  %v543_v40 = vmax.f32 %v525_v4, %v528_v34  ;;  %v551_v42 = vrot.slane %v550_v35, 4  ;;  %v453_v44 = vadd.f32 %v452_v37, %v226_v57 }
 0x187   :  { %v503_v45 = vadd.f32 %v502_v38, %v234_v58  ;;  %v454_v46 = vpop.f32.mrf.mxu0  ;;  %v504_v47 = vpop.f32.mrf.mxu1  ;;  %v513_v50 = vmax.f32 %v451_v36, 0.0  ;;  %v530_v60 = vmul.f32 %v518_v11, %v512_v41  ;;  %v532_v63 = vmul.f32 %v520_v16, %v514_v43 }
 0x188   :  { %v538_v48 = vmax.f32 %v536_v33, %v537_v39  ;;  %v544_v49 = vrot.slane %v543_v40, 4  ;;  %v455_v51 = vadd.f32 %v454_v46, %v230_v59  ;;  %v552_v52 = vmax.f32 %v550_v35, %v551_v42 }
 0x189   :  { %v515_v53 = vmax.f32 %v453_v44, 0.0  ;;  %v517_v54 = vmax.f32 %v503_v45, 0.0  ;;  %v531_v57 = vmul.f32 %v519_v21, %v513_v50 }
 0x18a   :  { %v539_v55 = vrot.slane %v538_v48, 2  ;;  %v545_v56 = vmax.f32 %v543_v40, %v544_v49  ;;  %v516_v61 = vmax.f32 %v455_v51, 0.0  ;;  %v553_v62 = vrot.slane %v552_v52, 2 }
 0x18b   :  { %v533_v0 = vmul.f32 %v521_v13, %v515_v53  ;;  %v535_v5 = vmul.f32 %v523_v19, %v517_v54  ;;  %v939_v54 = vld [vmem:[%s1387_s5] ss:$0 sm:$0xff] }
 0x18c   :  { %v546_v6 = vrot.slane %v545_v56, 2  ;;  %v534_v58 = vmul.f32 %v522_v23, %v516_v61  ;;  %v540_v7 = vmax.f32 %v538_v48, %v539_v55  ;;  %v554_v8 = vmax.f32 %v552_v52, %v553_v62 }
 0x18d   :  { %v557_v9 = vmax.f32 %v530_v60, %v533_v0  ;;  %v571_v10 = vmax.f32 %v532_v63, %v535_v5 }
 0x18e   :  { %v547_v12 = vmax.f32 %v545_v56, %v546_v6  ;;  %v564_v59 = vmax.f32 %v531_v57, %v534_v58  ;;  %v541_v17 = vrot.slane %v540_v7, 1  ;;  %v555_v18 = vrot.slane %v554_v8, 1 }
 0x18f   :  { %v558_v14 = vrot.slane %v557_v9, 4  ;;  %v572_v15 = vrot.slane %v571_v10, 4 }
 0x190   :  { %v565_v2 = vrot.slane %v564_v59, 4  ;;  %v548_v22 = vrot.slane %v547_v12, 1  ;;  %v542_v21 = vmax.f32 %v540_v7, %v541_v17  ;;  %v556_v23 = vmax.f32 %v554_v8, %v555_v18 }
 0x191   :  { %v559_v11 = vmax.f32 %v557_v9, %v558_v14  ;;  %v573_v20 = vmax.f32 %v571_v10, %v572_v15 }
 0x192   :  { %v566_v16 = vmax.f32 %v564_v59, %v565_v2  ;;  %v549_v1 = vmax.f32 %v547_v12, %v548_v22  ;;  %v578_v30 = vpack.c.bf16 %v542_v21, %v542_v21  ;;  %v580_v31 = vpack.c.bf16 %v556_v23, %v556_v23 }
 0x193   :  { %v560_v13 = vrot.slane %v559_v11, 2  ;;  %v574_v19 = vrot.slane %v573_v20, 2 }
 0x194   :  { %v567_v24 = vrot.slane %v566_v16, 2  ;;  %v579_v34 = vpack.c.bf16 %v549_v1, %v549_v1  ;;  %v645_v38 = vunpack.c.l.b16 %v578_v30  ;;  %v647_v39 = vunpack.c.l.b16 %v580_v31 }
 0x195   :  { %v561_v25 = vmax.f32 %v559_v11, %v560_v13  ;;  %v575_v26 = vmax.f32 %v573_v20, %v574_v19 }
 0x196   :  { %v568_v27 = vmax.f32 %v566_v16, %v567_v24  ;;  %v646_v42 = vunpack.c.l.b16 %v579_v34 }
 0x197   :  { %v562_v28 = vrot.slane %v561_v25, 1  ;;  %v576_v29 = vrot.slane %v575_v26, 1 }
 0x198   :  { %v569_v3 = vrot.slane %v568_v27, 1 }
 0x199   :  { %v563_v32 = vmax.f32 %v561_v25, %v562_v28  ;;  %v577_v4 = vmax.f32 %v575_v26, %v576_v29 }
 0x19a   :  { %v570_v33 = vmax.f32 %v568_v27, %v569_v3 }
 0x19b   :  { %v581_v35 = vpack.c.bf16 %v563_v32, %v563_v32  ;;  %v583_v36 = vpack.c.bf16 %v577_v4, %v577_v4 }
 0x19c   :  { %v582_v37 = vpack.c.bf16 %v570_v33, %v570_v33 }
 0x19d   :  { %v648_v40 = vunpack.c.l.b16 %v581_v35  ;;  %v650_v41 = vunpack.c.l.b16 %v583_v36 }
 0x19e   :  { %v649_v43 = vunpack.c.l.b16 %v582_v37 }
 0x19f   :  { %v654_v44 = vsel %vm651_vm8, %v650_v41, %v647_v39  ;;  %v652_v45 = vsel %vm651_vm8, %v648_v40, %v645_v38 }
 0x1a0   :  { %v657_v46 = vpack.c.b16 %v654_v44, %v654_v44  ;;  %v653_v47 = vsel %vm651_vm8, %v649_v43, %v646_v42  ;;  %v655_v49 = vpack.c.b16 %v652_v45, %v652_v45 }
 0x1a1   :  { %v656_v48 = vpack.c.b16 %v653_v47, %v653_v47 }
 0x1a2   :  { %1012 = vmatmul.mubr.bf16.vlgmr.msra.gmra.mxu1 %v657_v46 }
 0x1a3   :  { %837 = vmatprep.mubr.bf16.mxu0 %v656_v48 }
 0x1a4   :  { %838 = vmatmul.mubr.bf16.vlgmr.msra.gmra.mxu0 %v655_v49 }
 0x262   :  { %v879_v50 = vpop.f32.mrf.mxu1 }
 0x264   :  { %v1013_v51 = vpop.f32.mrf.mxu1  ;;  %v980_v52 = vpop.f32.mrf.mxu0 }
 0x266   :  { %v882_v53 = vpop.f32.mrf.mxu1  ;;  %v981_v55 = vpop.f32.mrf.mxu0 }
 0x267   :  { %v982_v56 = vadd.f32 %v981_v55, %v980_v52 }
 0x268   :  { %v1014_v60 = vpop.f32.mrf.mxu1  ;;  %v983_v61 = vpop.f32.mrf.mxu0 }
 0x269   :  { %v840_v62 = vadd.f32 %v982_v56, %v939_v54 }
 0x26a   :  { %v984_v63 = vpop.f32.mrf.mxu0 }
 0x26b   :  { %v880_v0 = vadd.f32 %v879_v50, %v840_v62 }
 0x26d   :  { %885 = vst [vmem:[#allocation10] sm:$0x3] %v880_v0 }
 0x26e   :  { %1190 = shalt.err (!%p1187_p10)
}
 0x26f   :  { %895 = dma.vmem_to_hbm [thread:$0]  %s893_s25, 32, %s1388_s6, [#allocation4]  }
 0x270   :  { %1205 = dma.done.wait [#allocation4], 32  }
 0x271   :  { %1206 = vsyncadd [#allocation4], 4294967264 }
 0x272   :  { %899 = vsyncpa [#allocation3], 1 }
 0x273   :  { %900 = vsyncpa [#allocation6], 1 }
 0x274   :  { %901 = vsyncpa [#allocation9], 1 }
 0x275   :  { %902 = vsyncpa [#allocation4], 1 }

</bundles_post_ra>
